<compile_context>
chip_gen: v7x
topology: tpu7x:2x2x1
jax: 0.10.0
libtpu: 0.0.40
codegen_flags: <defaults>
</compile_context>

<pallas_src>
import math
import functools

import jax
import jax.numpy as jnp
from jax import lax
from jax.experimental import pallas as pl
from jax.experimental.pallas import tpu as pltpu


def arcface_kernel(x_ref, w_ref, lbl_ref, loss_ref,
                   xn_ref, m_ref, l_ref, tgt_ref, *,
                   cos_m, sin_m, theta, sinmm, scale,
                   num_classes, c_tile, needs_col_mask):
    c = pl.program_id(1)
    nc = pl.num_programs(1)

    @pl.when(c == 0)
    def _init():
        # normalize the embedding tile once per batch tile; keep it resident as bf16
        x = x_ref[...].astype(jnp.float32)
        inv = lax.rsqrt(jnp.maximum(jnp.sum(x * x, axis=1, keepdims=True), 1e-24))
        xn_ref[...] = (x * inv).astype(xn_ref.dtype)
        m_ref[...] = jnp.full_like(m_ref, -jnp.inf)
        l_ref[...] = jnp.zeros_like(l_ref)
        tgt_ref[...] = jnp.zeros_like(tgt_ref)

    # normalize this class-weight tile (rsqrt -> EUP slot), bf16 for the MXU
    w = w_ref[...].astype(jnp.float32)
    winv = lax.rsqrt(jnp.maximum(jnp.sum(w * w, axis=1, keepdims=True), 1e-24))
    wn = (w * winv).astype(jnp.bfloat16)

    # (B_TILE, C_TILE) cosines: contract dim 1 of both operands -> no transpose
    cos = lax.dot_general(xn_ref[...], wn,
                          (((1,), (1,)), ((), ())),
                          preferred_element_type=jnp.float32)

    lbl = lbl_ref[...]                                        # (B_TILE, 1) int32
    bt, ct = cos.shape
    col = lax.broadcasted_iota(jnp.int32, (bt, ct), 1) + c * c_tile
    is_target = (col == lbl) & (lbl != -1)

    # accumulate the (unmodified) target cosine; margin math deferred to finalize
    tgt_ref[...] += jnp.sum(jnp.where(is_target, cos, 0.0), axis=1, keepdims=True)

    logits = cos * scale
    if needs_col_mask:  # classes padded to a multiple of the tile -> mask them out
        logits = jnp.where(col < num_classes, logits, -jnp.inf)

    # online logsumexp over class tiles (target still at its original value)
    m_prev = m_ref[...]
    m_new = jnp.maximum(m_prev, jnp.max(logits, axis=1, keepdims=True))
    alpha = jnp.exp(m_prev - m_new)
    l_ref[...] = alpha * l_ref[...] + jnp.sum(jnp.exp(logits - m_new), axis=1,
                                              keepdims=True)
    m_ref[...] = m_new

    @pl.when(c == nc - 1)
    def _finalize():
        has_lbl = (lbl_ref[...] != -1)
        t = tgt_ref[...]                                      # (B_TILE, 1) target cos
        sin_t = jnp.sqrt(jnp.maximum(1.0 - t * t, 0.0))       # clamp: bf16 matmul jitter
        cos_tm = t * cos_m - sin_t * sin_m
        final_t = jnp.where(t > theta, cos_tm, t - sinmm)
        final_logit = jnp.where(has_lbl, final_t, t) * scale
        orig_logit = t * scale
        m = m_ref[...]
        # swap exp(original target) for exp(margin-corrected target) in the sum
        corr = jnp.where(has_lbl,
                         jnp.exp(final_logit - m) - jnp.exp(orig_logit - m),
                         0.0)
        lse = m + jnp.log(l_ref[...] + corr)
        # TODO(synk): torch.nn.CrossEntropyLoss errors on label == -1; here such rows
        #             get no margin and contribute (lse - 0) — all labels assumed valid.
        loss_ref[...] = lse - final_logit


def _round_up(x, m):
    return ((x + m - 1) // m) * m


def arcface_loss(x, weight, labels, *, margin=0.5, scale=64.0,
                 max_c_tile=2048, max_b_tile=128):
    B, D = x.shape
    C, D2 = weight.shape
    assert D == D2

    B_TILE = min(max_b_tile, _round_up(B, 8))
    B_pad = _round_up(B, B_TILE)
    C_TILE = min(max_c_tile, _round_up(C, 128))   # lane-dense class tiles
    C_pad = _round_up(C, C_TILE)

    xp = x.astype(jnp.float32)
    lblp = labels.reshape(B, 1).astype(jnp.int32)
    if B_pad != B:
        xp = jnp.pad(xp, ((0, B_pad - B), (0, 0)))
        lblp = jnp.pad(lblp, ((0, B_pad - B), (0, 0)))
    # stream class weights as bf16 (halves the HBM weight stream); f32 MXU accumulation
    wp = weight.astype(jnp.bfloat16)
    if C_pad != C:
        wp = jnp.pad(wp, ((0, C_pad - C), (0, 0)))

    nb = B_pad // B_TILE
    nc = C_pad // C_TILE

    kernel = functools.partial(
        arcface_kernel,
        cos_m=math.cos(margin),
        sin_m=math.sin(margin),
        theta=math.cos(math.pi - margin),
        sinmm=math.sin(math.pi - margin) * margin,
        scale=float(scale),
        num_classes=C,
        c_tile=C_TILE,
        needs_col_mask=(C_pad != C),
    )

    per_row = pl.pallas_call(
        kernel,
        out_shape=jax.ShapeDtypeStruct((B_pad, 1), jnp.float32),
        grid_spec=pltpu.PrefetchScalarGridSpec(
            num_scalar_prefetch=0,
            grid=(nb, nc),
            in_specs=[
                pl.BlockSpec((B_TILE, D), lambda b, c: (b, 0)),   # embeddings (f32)
                pl.BlockSpec((C_TILE, D), lambda b, c: (c, 0)),   # weight tiles (bf16)
                pl.BlockSpec((B_TILE, 1), lambda b, c: (b, 0)),   # labels
            ],
            out_specs=pl.BlockSpec((B_TILE, 1), lambda b, c: (b, 0)),
            scratch_shapes=[
                pltpu.VMEM((B_TILE, D), jnp.bfloat16),   # normalized embeddings
                pltpu.VMEM((B_TILE, 1), jnp.float32),    # running max
                pltpu.VMEM((B_TILE, 1), jnp.float32),    # running sum-exp
                pltpu.VMEM((B_TILE, 1), jnp.float32),    # target cosine
            ],
        ),
        compiler_params=pltpu.CompilerParams(
            dimension_semantics=("parallel", "arbitrary")),
    )(xp, wp, lblp)

    return jnp.mean(per_row[:B, 0])


def arcface_loss_ref(x, weight, labels, *, margin=0.5, scale=64.0):
    # pure-JAX f32 reference for the correctness check
    cos_m, sin_m = math.cos(margin), math.sin(margin)
    theta = math.cos(math.pi - margin)
    sinmm = math.sin(math.pi - margin) * margin
    eps = 1e-12
    xn = x / jnp.maximum(jnp.linalg.norm(x, axis=1, keepdims=True), eps)
    wn = weight / jnp.maximum(jnp.linalg.norm(weight, axis=1, keepdims=True), eps)
    cos = xn @ wn.T
    onehot = (jnp.arange(cos.shape[1])[None, :] == labels[:, None]) & (labels[:, None] != -1)
    sin_theta = jnp.sqrt(jnp.maximum(1.0 - cos * cos, 0.0))
    final = jnp.where(cos > theta, cos * cos_m - sin_theta * sin_m, cos - sinmm)
    logits = jnp.where(onehot, final, cos) * scale
    lse = jax.scipy.special.logsumexp(logits, axis=1)
    tgt = jnp.take_along_axis(logits, labels[:, None], axis=1)[:, 0]
    return jnp.mean(lse - tgt)


if __name__ == "__main__":
    B, D, C = 8, 32, 128   # batch, embedding_size, num_classes
    key = jax.random.PRNGKey(0)
    kx, kw, kl = jax.random.split(key, 3)
    x = jax.random.normal(kx, (B, D), dtype=jnp.float32)               # embeddings
    weight = 0.01 * jax.random.normal(kw, (C, D), dtype=jnp.float32)   # ~ torch.normal(0, 0.01)
    labels = jax.random.randint(kl, (B,), 0, C, dtype=jnp.int32)

    loss = arcface_loss(x, weight, labels, margin=0.5, scale=64.0)
    jax.block_until_ready(loss)

    ref = arcface_loss_ref(x, weight, labels, margin=0.5, scale=64.0)
    # bf16 weight/embedding streaming into the MXU -> loosened tolerance vs the f32 reference
    assert jnp.allclose(loss, ref, rtol=5e-2, atol=5e-2), (loss, ref)
    print("KERNEL_OK")
</pallas_src>

<mosaic_0001>
module attributes {stable_mosaic.version = 11 : i64} {
  func.func @arcface_kernel(%arg0: i32, %arg1: i32, %arg2: memref<8x32xf32, #tpu.memory_space<vmem>>, %arg3: memref<128x32xbf16, #tpu.memory_space<vmem>>, %arg4: memref<8x1xi32, #tpu.memory_space<vmem>>, %arg5: memref<8x1xf32, #tpu.memory_space<vmem>>, %arg6: memref<8x32xbf16, #tpu.memory_space<vmem>>, %arg7: memref<8x1xf32, #tpu.memory_space<vmem>>, %arg8: memref<8x1xf32, #tpu.memory_space<vmem>>, %arg9: memref<8x1xf32, #tpu.memory_space<vmem>>) attributes {dimension_semantics = [#tpu.dimension_semantics<parallel>, #tpu.dimension_semantics<arbitrary>], iteration_bounds = array<i64: 1, 1>, scalar_prefetch = 0 : i64, scratch_operands = 4 : i64, tpu.core_type = #tpu.core_type<tc>, window_params = [{transform_indices = @transform_0, window_bounds = array<i64: 8, 32>}, {transform_indices = @transform_1, window_bounds = array<i64: 128, 32>}, {transform_indices = @transform_2, window_bounds = array<i64: 8, 1>}, {transform_indices = @transform_3, window_bounds = array<i64: 8, 1>}]} {
    %c0_i32 = arith.constant 0 : i32
    %0 = arith.cmpi eq, %arg1, %c0_i32 : i32
    %1 = arith.extui %0 : i1 to i32
    %c0_i32_0 = arith.constant 0 : i32
    %2 = arith.cmpi ne, %1, %c0_i32_0 : i32
    scf.if %2 {
      %c0_27 = arith.constant 0 : index
      %c0_28 = arith.constant 0 : index
      %55 = vector.load %arg2[%c0_27, %c0_28] : memref<8x32xf32, #tpu.memory_space<vmem>>, vector<8x32xf32>
      %56 = arith.mulf %55, %55 : vector<8x32xf32>
      %cst_29 = arith.constant dense<0.000000e+00> : vector<8xf32>
      %57 = vector.multi_reduction <add>, %56, %cst_29 [1] : vector<8x32xf32> to vector<8xf32>
      %58 = vector.shape_cast %57 : vector<8xf32> to vector<8x1xf32>
      %cst_30 = arith.constant 1.000000e-24 : f32
      %59 = vector.broadcast %cst_30 : f32 to vector<8x1xf32>
      %60 = arith.maximumf %58, %59 : vector<8x1xf32>
      %61 = math.rsqrt %60 : vector<8x1xf32>
      %62 = vector.broadcast %61 : vector<8x1xf32> to vector<8x32xf32>
      %63 = arith.mulf %55, %62 : vector<8x32xf32>
      %64 = arith.truncf %63 : vector<8x32xf32> to vector<8x32xbf16>
      %c0_31 = arith.constant 0 : index
      %c0_32 = arith.constant 0 : index
      %65 = vector.load %arg6[%c0_31, %c0_32] : memref<8x32xbf16, #tpu.memory_space<vmem>>, vector<8x32xbf16>
      tpu.vector_store %arg6[%c0_31, %c0_32], %64 {strides = array<i32>} : memref<8x32xbf16, #tpu.memory_space<vmem>>, vector<8x32xbf16>,
      %cst_33 = arith.constant 0xFF800000 : f32
      %66 = vector.broadcast %cst_33 : f32 to vector<8x1xf32>
      %c0_34 = arith.constant 0 : index
      %c0_35 = arith.constant 0 : index
      %67 = vector.load %arg7[%c0_34, %c0_35] : memref<8x1xf32, #tpu.memory_space<vmem>>, vector<8x1xf32>
      tpu.vector_store %arg7[%c0_34, %c0_35], %66 {strides = array<i32>} : memref<8x1xf32, #tpu.memory_space<vmem>>, vector<8x1xf32>,
      %cst_36 = arith.constant 0.000000e+00 : f32
      %68 = vector.broadcast %cst_36 : f32 to vector<8x1xf32>
      %c0_37 = arith.constant 0 : index
      %c0_38 = arith.constant 0 : index
      %69 = vector.load %arg8[%c0_37, %c0_38] : memref<8x1xf32, #tpu.memory_space<vmem>>, vector<8x1xf32>
      tpu.vector_store %arg8[%c0_37, %c0_38], %68 {strides = array<i32>} : memref<8x1xf32, #tpu.memory_space<vmem>>, vector<8x1xf32>,
      %cst_39 = arith.constant 0.000000e+00 : f32
      %70 = vector.broadcast %cst_39 : f32 to vector<8x1xf32>
      %c0_40 = arith.constant 0 : index
      %c0_41 = arith.constant 0 : index
      %71 = vector.load %arg9[%c0_40, %c0_41] : memref<8x1xf32, #tpu.memory_space<vmem>>, vector<8x1xf32>
      tpu.vector_store %arg9[%c0_40, %c0_41], %70 {strides = array<i32>} : memref<8x1xf32, #tpu.memory_space<vmem>>, vector<8x1xf32>,
    } else {
    }
    %c0 = arith.constant 0 : index
    %c0_1 = arith.constant 0 : index
    %3 = vector.load %arg3[%c0, %c0_1] : memref<128x32xbf16, #tpu.memory_space<vmem>>, vector<128x32xbf16>
    %4 = arith.extf %3 : vector<128x32xbf16> to vector<128x32xf32>
    %5 = arith.mulf %4, %4 : vector<128x32xf32>
    %cst = arith.constant dense<0.000000e+00> : vector<128xf32>
    %6 = vector.multi_reduction <add>, %5, %cst [1] : vector<128x32xf32> to vector<128xf32>
    %7 = vector.shape_cast %6 : vector<128xf32> to vector<128x1xf32>
    %cst_2 = arith.constant 1.000000e-24 : f32
    %8 = vector.broadcast %cst_2 : f32 to vector<128x1xf32>
    %9 = arith.maximumf %7, %8 : vector<128x1xf32>
    %10 = math.rsqrt %9 : vector<128x1xf32>
    %11 = vector.broadcast %10 : vector<128x1xf32> to vector<128x32xf32>
    %12 = arith.mulf %4, %11 : vector<128x32xf32>
    %13 = arith.truncf %12 : vector<128x32xf32> to vector<128x32xbf16>
    %c0_3 = arith.constant 0 : index
    %c0_4 = arith.constant 0 : index
    %14 = vector.load %arg6[%c0_3, %c0_4] : memref<8x32xbf16, #tpu.memory_space<vmem>>, vector<8x32xbf16>
    %cst_5 = arith.constant dense<0.000000e+00> : vector<8x128xf32>
    %15 = tpu.matmul %14, %13, %cst_5 {dimension_numbers = #tpu.dot_dimension_numbers<[1], [1], [0], [0], [0, 0, 1, 0], [], []>} : vector<8x32xbf16>, vector<128x32xbf16>, vector<8x128xf32> -> vector<8x128xf32>
    %c0_6 = arith.constant 0 : index
    %c0_7 = arith.constant 0 : index
    %16 = vector.load %arg4[%c0_6, %c0_7] : memref<8x1xi32, #tpu.memory_space<vmem>>, vector<8x1xi32>
    %17 = tpu.iota {dimensions = array<i32: 1>} : vector<8x128xi32>
    %c128_i32 = arith.constant 128 : i32
    %18 = arith.muli %arg1, %c128_i32 : i32
    %19 = vector.broadcast %18 : i32 to vector<8x128xi32>
    %20 = arith.addi %17, %19 : vector<8x128xi32>
    %21 = vector.broadcast %16 : vector<8x1xi32> to vector<8x128xi32>
    %22 = arith.cmpi eq, %20, %21 : vector<8x128xi32>
    %c-1_i32 = arith.constant -1 : i32
    %23 = vector.broadcast %c-1_i32 : i32 to vector<8x1xi32>
    %24 = arith.cmpi ne, %16, %23 : vector<8x1xi32>
    %25 = vector.broadcast %24 : vector<8x1xi1> to vector<8x128xi1>
    %26 = arith.andi %22, %25 : vector<8x128xi1>
    %c0_8 = arith.constant 0 : index
    %c0_9 = arith.constant 0 : index
    %27 = vector.load %arg9[%c0_8, %c0_9] : memref<8x1xf32, #tpu.memory_space<vmem>>, vector<8x1xf32>
    %cst_10 = arith.constant 0.000000e+00 : f32
    %28 = vector.broadcast %cst_10 : f32 to vector<8x128xf32>
    %29 = arith.select %26, %15, %28 : vector<8x128xi1>, vector<8x128xf32>
    %cst_11 = arith.constant dense<0.000000e+00> : vector<8xf32>
    %30 = vector.multi_reduction <add>, %29, %cst_11 [1] : vector<8x128xf32> to vector<8xf32>
    %31 = vector.shape_cast %30 : vector<8xf32> to vector<8x1xf32>
    %32 = arith.addf %27, %31 : vector<8x1xf32>
    %c0_12 = arith.constant 0 : index
    %c0_13 = arith.constant 0 : index
    %33 = vector.load %arg9[%c0_12, %c0_13] : memref<8x1xf32, #tpu.memory_space<vmem>>, vector<8x1xf32>
    tpu.vector_store %arg9[%c0_12, %c0_13], %32 {strides = array<i32>} : memref<8x1xf32, #tpu.memory_space<vmem>>, vector<8x1xf32>,
    %cst_14 = arith.constant 6.400000e+01 : f32
    %34 = vector.broadcast %cst_14 : f32 to vector<8x128xf32>
    %35 = arith.mulf %15, %34 : vector<8x128xf32>
    %c0_15 = arith.constant 0 : index
    %c0_16 = arith.constant 0 : index
    %36 = vector.load %arg7[%c0_15, %c0_16] : memref<8x1xf32, #tpu.memory_space<vmem>>, vector<8x1xf32>
    %cst_17 = arith.constant dense<0xFF800000> : vector<8xf32>
    %37 = vector.multi_reduction <maximumf>, %35, %cst_17 [1] : vector<8x128xf32> to vector<8xf32>
    %38 = vector.shape_cast %37 : vector<8xf32> to vector<8x1xf32>
    %39 = arith.maximumf %36, %38 : vector<8x1xf32>
    %40 = arith.subf %36, %39 : vector<8x1xf32>
    %41 = math.exp %40 : vector<8x1xf32>
    %c0_18 = arith.constant 0 : index
    %c0_19 = arith.constant 0 : index
    %42 = vector.load %arg8[%c0_18, %c0_19] : memref<8x1xf32, #tpu.memory_space<vmem>>, vector<8x1xf32>
    %43 = arith.mulf %41, %42 : vector<8x1xf32>
    %44 = vector.broadcast %39 : vector<8x1xf32> to vector<8x128xf32>
    %45 = arith.subf %35, %44 : vector<8x128xf32>
    %46 = math.exp %45 : vector<8x128xf32>
    %cst_20 = arith.constant dense<0.000000e+00> : vector<8xf32>
    %47 = vector.multi_reduction <add>, %46, %cst_20 [1] : vector<8x128xf32> to vector<8xf32>
    %48 = vector.shape_cast %47 : vector<8xf32> to vector<8x1xf32>
    %49 = arith.addf %43, %48 : vector<8x1xf32>
    %c0_21 = arith.constant 0 : index
    %c0_22 = arith.constant 0 : index
    %50 = vector.load %arg8[%c0_21, %c0_22] : memref<8x1xf32, #tpu.memory_space<vmem>>, vector<8x1xf32>
    tpu.vector_store %arg8[%c0_21, %c0_22], %49 {strides = array<i32>} : memref<8x1xf32, #tpu.memory_space<vmem>>, vector<8x1xf32>,
    %c0_23 = arith.constant 0 : index
    %c0_24 = arith.constant 0 : index
    %51 = vector.load %arg7[%c0_23, %c0_24] : memref<8x1xf32, #tpu.memory_space<vmem>>, vector<8x1xf32>
    tpu.vector_store %arg7[%c0_23, %c0_24], %39 {strides = array<i32>} : memref<8x1xf32, #tpu.memory_space<vmem>>, vector<8x1xf32>,
    %c0_i32_25 = arith.constant 0 : i32
    %52 = arith.cmpi eq, %arg1, %c0_i32_25 : i32
    %53 = arith.extui %52 : i1 to i32
    %c0_i32_26 = arith.constant 0 : i32
    %54 = arith.cmpi ne, %53, %c0_i32_26 : i32
    scf.if %54 {
      %c0_27 = arith.constant 0 : index
      %c0_28 = arith.constant 0 : index
      %55 = vector.load %arg4[%c0_27, %c0_28] : memref<8x1xi32, #tpu.memory_space<vmem>>, vector<8x1xi32>
      %c-1_i32_29 = arith.constant -1 : i32
      %56 = vector.broadcast %c-1_i32_29 : i32 to vector<8x1xi32>
      %57 = arith.cmpi ne, %55, %56 : vector<8x1xi32>
      %c0_30 = arith.constant 0 : index
      %c0_31 = arith.constant 0 : index
      %58 = vector.load %arg9[%c0_30, %c0_31] : memref<8x1xf32, #tpu.memory_space<vmem>>, vector<8x1xf32>
      %59 = arith.mulf %58, %58 : vector<8x1xf32>
      %cst_32 = arith.constant 1.000000e+00 : f32
      %60 = vector.broadcast %cst_32 : f32 to vector<8x1xf32>
      %61 = arith.subf %60, %59 : vector<8x1xf32>
      %cst_33 = arith.constant 0.000000e+00 : f32
      %62 = vector.broadcast %cst_33 : f32 to vector<8x1xf32>
      %63 = arith.maximumf %61, %62 : vector<8x1xf32>
      %64 = math.sqrt %63 : vector<8x1xf32>
      %cst_34 = arith.constant 0.87758255 : f32
      %65 = vector.broadcast %cst_34 : f32 to vector<8x1xf32>
      %66 = arith.mulf %58, %65 : vector<8x1xf32>
      %cst_35 = arith.constant 0.47942555 : f32
      %67 = vector.broadcast %cst_35 : f32 to vector<8x1xf32>
      %68 = arith.mulf %64, %67 : vector<8x1xf32>
      %69 = arith.subf %66, %68 : vector<8x1xf32>
      %cst_36 = arith.constant -0.87758255 : f32
      %70 = vector.broadcast %cst_36 : f32 to vector<8x1xf32>
      %71 = arith.cmpf ogt, %58, %70 : vector<8x1xf32>
      %cst_37 = arith.constant 0.239712775 : f32
      %72 = vector.broadcast %cst_37 : f32 to vector<8x1xf32>
      %73 = arith.subf %58, %72 : vector<8x1xf32>
      %74 = arith.select %71, %69, %73 : vector<8x1xi1>, vector<8x1xf32>
      %75 = arith.select %57, %74, %58 : vector<8x1xi1>, vector<8x1xf32>
      %cst_38 = arith.constant 6.400000e+01 : f32
      %76 = vector.broadcast %cst_38 : f32 to vector<8x1xf32>
      %77 = arith.mulf %75, %76 : vector<8x1xf32>
      %cst_39 = arith.constant 6.400000e+01 : f32
      %78 = vector.broadcast %cst_39 : f32 to vector<8x1xf32>
      %79 = arith.mulf %58, %78 : vector<8x1xf32>
      %c0_40 = arith.constant 0 : index
      %c0_41 = arith.constant 0 : index
      %80 = vector.load %arg7[%c0_40, %c0_41] : memref<8x1xf32, #tpu.memory_space<vmem>>, vector<8x1xf32>
      %81 = arith.subf %77, %80 : vector<8x1xf32>
      %82 = math.exp %81 : vector<8x1xf32>
      %83 = arith.subf %79, %80 : vector<8x1xf32>
      %84 = math.exp %83 : vector<8x1xf32>
      %85 = arith.subf %82, %84 : vector<8x1xf32>
      %cst_42 = arith.constant 0.000000e+00 : f32
      %86 = vector.broadcast %cst_42 : f32 to vector<8x1xf32>
      %87 = arith.select %57, %85, %86 : vector<8x1xi1>, vector<8x1xf32>
      %c0_43 = arith.constant 0 : index
      %c0_44 = arith.constant 0 : index
      %88 = vector.load %arg8[%c0_43, %c0_44] : memref<8x1xf32, #tpu.memory_space<vmem>>, vector<8x1xf32>
      %89 = arith.addf %88, %87 : vector<8x1xf32>
      %90 = math.log %89 : vector<8x1xf32>
      %91 = arith.addf %80, %90 : vector<8x1xf32>
      %92 = arith.subf %91, %77 : vector<8x1xf32>
      %c0_45 = arith.constant 0 : index
      %c0_46 = arith.constant 0 : index
      %93 = vector.load %arg5[%c0_45, %c0_46] : memref<8x1xf32, #tpu.memory_space<vmem>>, vector<8x1xf32>
      tpu.vector_store %arg5[%c0_45, %c0_46], %92 {strides = array<i32>} : memref<8x1xf32, #tpu.memory_space<vmem>>, vector<8x1xf32>,
    } else {
    }
    return
  }
  func.func @transform_0(%arg0: i32, %arg1: i32) -> (i32, i32) {
    %c0_i32 = arith.constant 0 : i32
    %c0_i32_0 = arith.constant 0 : i32
    return %arg0, %c0_i32 : i32, i32
  }
  func.func @transform_1(%arg0: i32, %arg1: i32) -> (i32, i32) {
    %c0_i32 = arith.constant 0 : i32
    %c0_i32_0 = arith.constant 0 : i32
    return %arg1, %c0_i32 : i32, i32
  }
  func.func @transform_2(%arg0: i32, %arg1: i32) -> (i32, i32) {
    %c0_i32 = arith.constant 0 : i32
    %c0_i32_0 = arith.constant 0 : i32
    return %arg0, %c0_i32 : i32, i32
  }
  func.func @transform_3(%arg0: i32, %arg1: i32) -> (i32, i32) {
    %c0_i32 = arith.constant 0 : i32
    %c0_i32_0 = arith.constant 0 : i32
    return %arg0, %c0_i32 : i32, i32
  }
}

</mosaic_0001>

<bundles_post_ra>
// kernel: tpu_custom_call.1
= control target key start
LH: loop header
LB: loop body
LE: loop exit
PB: predicated region body
PF: predicated region fallthrough
CT: control target
= control target key end

     0   :  { %vm21_vm0 = vcmask 261120   ;;  %v470_v58 = vmov 0.0   ;;  %vm471_vm1 = vmmov 0   ;;  %vm29_vm2 = vcmask 257024   ;;  %s666_s1 = inlined_call_operand.vmem [shape: bf16[128,32], index: 1, kind: input, shape index: {}]   ;;  %s667_s0 = inlined_call_operand.vmem [shape: f32[8,32], index: 0, kind: input, shape index: {}]   ;;  %s668_s2 = inlined_call_operand.vmem [shape: s32[8,1], index: 2, kind: input, shape index: {}]   ;;  %s669_s3 = inlined_call_operand.vmem [shape: f32[8,1], index: 3, kind: output, shape index: {}]  }
   0x1   :  { %v351_v0 = vld [vmem:[%s666_s1] sm:$0xff]   ;;  %v382_v1 = vld [vmem:[%s666_s1 + $0x8] sm:$0xff]   ;;  %v383_v2 = vld [vmem:[%s666_s1 + $0x10] sm:$0xff]   ;;  %398 = vmatprep.subr.bf16.mxu0 %v470_v58  ;;  %414 = vmatprep.mubr.msk.bf16.mxu0 %vm471_vm1, %v470_v58  ;;  %vm31_vm3 = vcmask 7168  }
   0x2   :  { %v503_v3 = vunpack.c.l.bf16 %v351_v0  ;;  %v505_v4 = vunpack.c.l.bf16 %v382_v1  ;;  %v507_v5 = vunpack.c.h.bf16 %v351_v0  ;;  %v509_v6 = vunpack.c.h.bf16 %v382_v1  ;;  %v384_v13 = vld [vmem:[%s666_s1 + $0x18] sm:$0xff]   ;;  %v385_v22 = vld [vmem:[%s666_s1 + $0x20] sm:$0xff]   ;;  %v386_v29 = vld [vmem:[%s666_s1 + $0x28] sm:$0xff]   ;;  %33 = vst.msk [vmem:[#allocation4] sm:$0xff] %vm31_vm3, %v470_v58 }
   0x3   :  { %v511_v7 = vunpack.c.h.bf16 %v383_v2  ;;  %v513_v8 = vunpack.c.l.bf16 %v383_v2  ;;  %v528_v16 = vunpack.c.h.bf16 %v384_v13  ;;  %v530_v17 = vunpack.c.l.bf16 %v384_v13  ;;  %v387_v36 = vld [vmem:[%s666_s1 + $0x30] sm:$0xff]   ;;  %v388_v43 = vld [vmem:[%s666_s1 + $0x38] sm:$0xff]   ;;  %v591_v49 = vld [vmem:[%s667_s0] sm:$0xff]  ;;  %34 = vst.msk [vmem:[#allocation5] sm:$0xff] %vm31_vm3, %v470_v58 }
   0x4   :  { %v67_v9 = vmul.f32 %v503_v3, %v503_v3  ;;  %v69_v10 = vmul.f32 %v505_v4, %v505_v4  ;;  %v68_v11 = vmul.f32 %v507_v5, %v507_v5  ;;  %v70_v12 = vmul.f32 %v509_v6, %v509_v6 }
   0x5   :  { %v72_v20 = vmul.f32 %v511_v7, %v511_v7  ;;  %v71_v21 = vmul.f32 %v513_v8, %v513_v8  ;;  %v74_v23 = vmul.f32 %v528_v16, %v528_v16  ;;  %v73_v24 = vmul.f32 %v530_v17, %v530_v17 }
   0x6   :  { %v84_v14 = vsel %vm21_vm0, %v67_v9, 0.0  ;;  %v90_v15 = vsel %vm21_vm0, %v69_v10, 0.0  ;;  %v87_v18 = vsel %vm21_vm0, %v68_v11, 0.0  ;;  %v93_v19 = vsel %vm21_vm0, %v70_v12, 0.0 }
   0x7   :  { %85 = vadd.xlane.f32.xlu0 %v84_v14  ;;  %91 = vadd.xlane.f32.xlu1 %v90_v15  ;;  %v99_v25 = vsel %vm21_vm0, %v72_v20, 0.0  ;;  %v96_v26 = vsel %vm21_vm0, %v71_v21, 0.0  ;;  %v547_v27 = vunpack.c.h.bf16 %v385_v22  ;;  %v549_v28 = vunpack.c.l.bf16 %v385_v22 }
   0x8   :  { %v105_v30 = vsel %vm21_vm0, %v74_v23, 0.0  ;;  %v102_v31 = vsel %vm21_vm0, %v73_v24, 0.0  ;;  %v560_v34 = vunpack.c.h.bf16 %v386_v29  ;;  %v562_v35 = vunpack.c.l.bf16 %v386_v29 }
   0x9   :  { %v76_v32 = vmul.f32 %v547_v27, %v547_v27  ;;  %v75_v33 = vmul.f32 %v549_v28, %v549_v28  ;;  %v567_v37 = vunpack.c.h.bf16 %v387_v36  ;;  %v569_v38 = vunpack.c.l.bf16 %v387_v36 }
   0xa   :  { %v78_v41 = vmul.f32 %v560_v34, %v560_v34  ;;  %v77_v42 = vmul.f32 %v562_v35, %v562_v35  ;;  %v580_v44 = vunpack.c.l.bf16 %v388_v43  ;;  %v20_v50 = vmul.f32 %v591_v49, %v591_v49 }
   0xb   :  { %88 = vadd.xlane.f32.xlu0 %v87_v18  ;;  %94 = vadd.xlane.f32.xlu1 %v93_v19  ;;  %v111_v39 = vsel %vm21_vm0, %v76_v32, 0.0  ;;  %v108_v40 = vsel %vm21_vm0, %v75_v33, 0.0  ;;  %v80_v47 = vmul.f32 %v567_v37, %v567_v37  ;;  %v79_v48 = vmul.f32 %v569_v38, %v569_v38 }
   0xc   :  { %v117_v45 = vsel %vm21_vm0, %v78_v41, 0.0  ;;  %v114_v46 = vsel %vm21_vm0, %v77_v42, 0.0  ;;  %v81_v53 = vmul.f32 %v580_v44, %v580_v44  ;;  %v599_v54 = vunpack.c.h.bf16 %v388_v43 }
   0xd   :  { %v123_v51 = vsel %vm21_vm0, %v80_v47, 0.0  ;;  %v120_v52 = vsel %vm21_vm0, %v79_v48, 0.0  ;;  %v22_v55 = vsel %vm21_vm0, %v20_v50, 0.0 }
   0xe   :  { %v126_v56 = vsel %vm21_vm0, %v81_v53, 0.0  ;;  %v82_v57 = vmul.f32 %v599_v54, %v599_v54 }
   0xf   :  { %100 = vadd.xlane.f32.xlu1 %v99_v25  ;;  %97 = vadd.xlane.f32.xlu0 %v96_v26 }
  0x10   :  { %v129_v59 = vsel %vm21_vm0, %v82_v57, 0.0 }
  0x13   :  { %106 = vadd.xlane.f32.xlu1 %v105_v30  ;;  %103 = vadd.xlane.f32.xlu0 %v102_v31 }
  0x17   :  { %112 = vadd.xlane.f32.xlu1 %v111_v39  ;;  %109 = vadd.xlane.f32.xlu0 %v108_v40 }
  0x1b   :  { %118 = vadd.xlane.f32.xlu1 %v117_v45  ;;  %115 = vadd.xlane.f32.xlu0 %v114_v46 }
  0x1f   :  { %124 = vadd.xlane.f32.xlu1 %v123_v51  ;;  %121 = vadd.xlane.f32.xlu0 %v120_v52 }
  0x23   :  { %23 = vadd.xlane.f32.xlu0 %v22_v55  ;;  %127 = vadd.xlane.f32.xlu1 %v126_v56 }
  0x27   :  { %130 = vadd.xlane.f32.xlu0 %v129_v59 }
  0x94   :  { %v86_v60 = vpop.xlane.xlu0 %85  ;;  %v92_v61 = vpop.xlane.xlu1 %91 }
  0x95   :  { %v132_v62 = vmax.f32 %v86_v60, 1e-24  ;;  %v134_v63 = vmax.f32 %v92_v61, 1e-24 }
  0x97   :  { %424 = vrsqrt.f32 %v132_v62 }
  0x98   :  { %v89_v0 = vpop.xlane.xlu0 %88  ;;  %v95_v1 = vpop.xlane.xlu1 %94 }
  0x99   :  { %v133_v2 = vmax.f32 %v89_v0, 1e-24  ;;  %v135_v9 = vmax.f32 %v95_v1, 1e-24 }
  0x9b   :  { %426 = vrsqrt.f32 %v133_v2 }
  0x9c   :  { %428 = vrsqrt.f32 %v134_v63  ;;  %v101_v10 = vpop.xlane.xlu1 %100  ;;  %v98_v11 = vpop.xlane.xlu0 %97 }
  0x9d   :  { %430 = vrsqrt.f32 %v135_v9  ;;  %v137_v12 = vmax.f32 %v101_v10, 1e-24  ;;  %v136_v13 = vmax.f32 %v98_v11, 1e-24 }
  0x9f   :  { %432 = vrsqrt.f32 %v137_v12 }
  0xa0   :  { %v104_v14 = vpop.xlane.xlu0 %103  ;;  %434 = vrsqrt.f32 %v136_v13  ;;  %v107_v18 = vpop.xlane.xlu1 %106 }
  0xa1   :  { %v425_v15 = vpop.eup %424  ;;  %v139_v24 = vmax.f32 %v107_v18, 1e-24  ;;  %v138_v26 = vmax.f32 %v104_v14, 1e-24 }
  0xa2   :  { %v164_v22 = vmul.f32 %v425_v15, %v503_v3 }
  0xa3   :  { %436 = vrsqrt.f32 %v139_v24 }
  0xa4   :  { %v110_v19 = vpop.xlane.xlu0 %109  ;;  %v113_v36 = vpop.xlane.xlu1 %112  ;;  %438 = vrsqrt.f32 %v138_v26 }
  0xa5   :  { %v427_v20 = vpop.eup %426  ;;  %v141_v40 = vmax.f32 %v113_v36, 1e-24  ;;  %v140_v42 = vmax.f32 %v110_v19, 1e-24 }
  0xa6   :  { %v429_v21 = vpop.eup %428  ;;  %v165_v23 = vmul.f32 %v427_v20, %v507_v5 }
  0xa7   :  { %v431_v25 = vpop.eup %430  ;;  %v166_v32 = vmul.f32 %v429_v21, %v505_v4  ;;  %440 = vrsqrt.f32 %v141_v40 }
  0xa8   :  { %v180_v29 = vpack.c.bf16 %v165_v23, %v164_v22  ;;  %v116_v30 = vpop.xlane.xlu0 %115  ;;  %v167_v33 = vmul.f32 %v431_v25, %v509_v6  ;;  %442 = vrsqrt.f32 %v140_v42  ;;  %v119_v47 = vpop.xlane.xlu1 %118 }
  0xa9   :  { %v433_v39 = vpop.eup %432  ;;  %v143_v52 = vmax.f32 %v119_v47, 1e-24  ;;  %v142_v53 = vmax.f32 %v116_v30, 1e-24 }
  0xaa   :  { %v193_v31 = vsel %vm21_vm0, %v180_v29, 0  ;;  %v435_v5 = vpop.eup %434  ;;  %v181_v41 = vpack.c.bf16 %v167_v33, %v166_v32  ;;  %v169_v45 = vmul.f32 %v433_v39, %v511_v7  ;;  %v644_v32 = vld [vmem:[%s668_s2] sm:$0xff] }
  0xab   :  { %399 = vmatpush3.bf16.xpose.msra.mxu0 %v193_v31  ;;  %v168_v43 = vmul.f32 %v435_v5, %v513_v8  ;;  %v472_v31 = vmov 0   ;;  %vm307_vm4 = vcmp.ne.s32.totalorder %v644_v32, 4294967295 }
  0xac   :  { %400 = vmatprep.subr.bf16.mxu0 %v470_v58  ;;  %v122_v3 = vpop.xlane.xlu0 %121  ;;  %v196_v6 = vsel %vm21_vm0, %v181_v41, 0  ;;  %v125_v57 = vpop.xlane.xlu1 %124  ;;  %423 = vset.pattern.permute.xlu1 %v472_v31  ;;  %v267_v5 = vsel %vm307_vm4, 1, %v472_v31 }
  0xad   :  { %v437_v48 = vpop.eup %436  ;;  %v182_v50 = vpack.c.bf16 %v169_v45, %v168_v43  ;;  %v145_v62 = vmax.f32 %v125_v57, 1e-24  ;;  %v144_v0 = vmax.f32 %v122_v3, 1e-24  ;;  %422 = vset.pattern.permute.xlu0 %v472_v31 }
  0xae   :  { %v439_v51 = vpop.eup %438  ;;  %v171_v55 = vmul.f32 %v437_v48, %v528_v16  ;;  %263 = vperm.xlu0 %422, %v644_v32  }
  0xaf   :  { %v199_v8 = vsel %vm21_vm0, %v182_v50, 0  ;;  %v170_v7 = vmul.f32 %v439_v51, %v530_v17 }
  0xb0   :  { %v24_v46 = vpop.xlane.xlu0 %23  ;;  %v128_v9 = vpop.xlane.xlu1 %127 }
  0xb1   :  { %v25_v4 = vmax.f32 %v24_v46, 1e-24  ;;  %v441_v56 = vpop.eup %440  ;;  %v183_v60 = vpack.c.bf16 %v171_v55, %v170_v7  ;;  %v146_v13 = vmax.f32 %v128_v9, 1e-24 }
  0xb2   :  { %v443_v59 = vpop.eup %442  ;;  %v173_v16 = vmul.f32 %v441_v56, %v547_v27 }
  0xb3   :  { %401 = vmatpush3.bf16.xpose.msra.mxu0 %v196_v6  ;;  %444 = vrsqrt.f32 %v25_v4  ;;  %v202_v1 = vsel %vm21_vm0, %v183_v60, 0  ;;  %v172_v17 = vmul.f32 %v443_v59, %v549_v28 }
  0xb4   :  { %402 = vmatprep.subr.bf16.mxu0 %v470_v58  ;;  %446 = vrsqrt.f32 %v143_v52  ;;  %v131_v12 = vpop.xlane.xlu0 %130  ;;  %v273_v52 = vld [vmem:[#allocation5] sm:$0xff] }
  0xb5   :  { %448 = vrsqrt.f32 %v142_v53  ;;  %v184_v11 = vpack.c.bf16 %v173_v16, %v172_v17  ;;  %v147_v14 = vmax.f32 %v131_v12, 1e-24 }
  0xb6   :  { %450 = vrsqrt.f32 %v145_v62 }
  0xb7   :  { %452 = vrsqrt.f32 %v144_v0  ;;  %v205_v15 = vsel %vm21_vm0, %v184_v11, 0 }
  0xb8   :  { %454 = vrsqrt.f32 %v146_v13 }
  0xb9   :  { %456 = vrsqrt.f32 %v147_v14 }
  0xbb   :  { %403 = vmatpush3.bf16.xpose.msra.mxu0 %v199_v8 }
  0xbc   :  { %404 = vmatprep.subr.bf16.mxu0 %v470_v58 }
  0xbd   :  { %v445_v61 = vpop.eup %444 }
  0xbe   :  { %v27_v63 = vmul.f32 %v445_v61, %v591_v49  ;;  %v447_v10 = vpop.eup %446 }
  0xbf   :  { %v449_v49 = vpop.eup %448  ;;  %v175_v27 = vmul.f32 %v447_v10, %v560_v34 }
  0xc0   :  { %v28_v2 = vpack.c.bf16 %v27_v63, %v27_v63  ;;  %v174_v28 = vmul.f32 %v449_v49, %v562_v35  ;;  %v451_v18 = vpop.eup %450 }
  0xc1   :  { %v453_v20 = vpop.eup %452  ;;  %v177_v23 = vmul.f32 %v451_v18, %v567_v37  ;;  %v288_v18 = vld [vmem:[#allocation4] sm:$0xff] }
  0xc2   :  { %30 = vst.msk [vmem:[#allocation2] sm:$0xf] %vm29_vm2, %v28_v2  ;;  %v185_v19 = vpack.c.bf16 %v175_v27, %v174_v28  ;;  %v176_v22 = vmul.f32 %v453_v20, %v569_v38  ;;  %v455_v24 = vpop.eup %454 }
  0xc3   :  { %405 = vmatpush3.bf16.xpose.msra.mxu0 %v202_v1  ;;  %v457_v34 = vpop.eup %456  ;;  %v178_v26 = vmul.f32 %v455_v24, %v580_v44  ;;  %v473_v44 = vmov -inf  }
  0xc4   :  { %406 = vmatprep.subr.bf16.mxu0 %v470_v58  ;;  %v208_v21 = vsel %vm21_vm0, %v185_v19, 0  ;;  %v186_v35 = vpack.c.bf16 %v177_v23, %v176_v22  ;;  %v179_v29 = vmul.f32 %v457_v34, %v599_v54  ;;  %32 = vst.msk [vmem:[#allocation3] sm:$0xff] %vm31_vm3, %v473_v44 }
  0xc6   :  { %v211_v25 = vsel %vm21_vm0, %v186_v35, 0  ;;  %v187_v30 = vpack.c.bf16 %v179_v29, %v178_v26 }
  0xc8   :  { %v214_v38 = vsel %vm21_vm0, %v187_v30, 0 }
  0xc9   :  { %v188_v37 = vld [vmem:[#allocation2] sm:$0xf] }
  0xcb   :  { %407 = vmatpush3.bf16.xpose.msra.mxu0 %v205_v15  ;;  %v281_v40 = vld [vmem:[#allocation3] sm:$0xff] }
  0xcc   :  { %408 = vmatprep.subr.bf16.mxu0 %v470_v58 }
  0xd3   :  { %409 = vmatpush3.bf16.xpose.msra.mxu0 %v208_v21 }
  0xd4   :  { %410 = vmatprep.subr.bf16.mxu0 %v470_v58 }
  0xdb   :  { %411 = vmatpush3.bf16.xpose.msra.mxu0 %v211_v25 }
  0xdc   :  { %412 = vmatprep.subr.bf16.mxu0 %v470_v58  ;;  %v257_v58 = vlaneseq }
  0xde   :  { %v258_v45 = vand.u32 127, %v257_v58 }
  0xe3   :  { %413 = vmatpush3.bf16.xpose.msra.mxu0 %v214_v38 }
  0xea   :  { %415 = vmatmul.mubr.msk.bf16.vlgmr.msra.gmra.mrb[0].mxu0 %vm21_vm0, %v188_v37 }
 0x12d   :  { %v264_v4 = vpop.permute.xlu0 %263 }
 0x12e   :  { %vm265_vm6 = vcmp.eq.s32.totalorder %v258_v45, %v264_v4 }
 0x1bd   :  { %v250_v54 = vpop.f32.mrb[0].mxu0 }
 0x1be   :  { %v416_v33 = vpop.f32.mrb[1].mxu0  ;;  %v280_v36 = vmul.f32 64.0, %v250_v54 }
 0x1bf   :  { %v253_v39 = vpop.f32.mrb[2].mxu0 }
 0x1c0   :  { %282 = vmax.xlane.f32.xlu1 %v280_v36  ;;  %v417_v3 = vpop.f32.mrb[3].mxu0 }
 0x1d1   :  { %269 = vperm.xlu1 %423, %v267_v5  }
 0x24d   :  { %v283_v41 = vpop.xlane.xlu1 %282 }
 0x24e   :  { %v284_v42 = vmax.f32 %v281_v40, %v283_v41 }
 0x250   :  { %v285_v43 = vsub.f32 %v281_v40, %v284_v42  ;;  %302 = vst.msk [vmem:[#allocation3] sm:$0xff] %vm31_vm3, %v284_v42  ;;  %292 = vperm.xlu1 %423, %v284_v42  }
 0x251   :  { %v270_v46 = vpop.permute.xlu1 %269 }
 0x252   :  { %vm271_vm5 = vcmp.eq.s32.totalorder %v270_v46, 1  ;;  %v286_v11 = vmul.f32 1.442695, %v285_v43 }
 0x253   :  { %vm272_vm7 = vmand %vm265_vm6, %vm271_vm5 }
 0x254   :  { %v274_v6 = vsel %vm272_vm7, %v250_v54, 0.0 }
 0x257   :  { %v328_v49 = vld [vmem:[#allocation3] sm:$0xff] }
 0x274   :  { %275 = vadd.xlane.f32.xlu1 %v274_v6 }
 0x2cf   :  { %v293_v47 = vpop.permute.xlu1 %292 }
 0x2d0   :  { %v295_v48 = vsub.f32 %v280_v36, %v293_v47 }
 0x2d2   :  { %v296_v50 = vmul.f32 1.442695, %v295_v48 }
 0x2d4   :  { %458 = vpow2.f32 %v296_v50 }
 0x2de   :  { %v459_v51 = vpop.eup %458 }
 0x2df   :  { %298 = vadd.xlane.f32.xlu0 %v459_v51 }
 0x301   :  { %v276_v53 = vpop.xlane.xlu1 %275 }
 0x302   :  { %v277_v8 = vadd.f32 %v276_v53, %v273_v52 }
 0x304   :  { %279 = vst.msk [vmem:[#allocation5] sm:$0xff] %vm31_vm3, %v277_v8 }
 0x30b   :  { %v308_v7 = vld [vmem:[#allocation5] sm:$0xff] }
 0x30c   :  { %v309_v55 = vmul.f32 %v308_v7, %v308_v7  ;;  %v319_v1 = vmul.f32 0.87758255, %v308_v7  ;;  %v349_v16 = vadd.f32 -0.23971277, %v308_v7  ;;  %vm322_vm10 = vcmp.gt.f32.partialorder %v308_v7, -0.87758255 }
 0x30d   :  { %v327_v12 = vmul.f32 64.0, %v308_v7 }
 0x30e   :  { %v310_v56 = vsub.f32 1.0, %v309_v55 }
 0x30f   :  { %v332_v14 = vsub.f32 %v327_v12, %v328_v49 }
 0x310   :  { %v311_v57 = vmax.f32 %v310_v56, 0.0 }
 0x311   :  { %v333_v28 = vmul.f32 1.442695, %v332_v14 }
 0x312   :  { %460 = vrsqrt.f32 %v311_v57  ;;  %vm314_vm8 = vcmp.eq.f32.partialorder %v311_v57, inf  ;;  %v317_v62 = vand.u32 2147483648, %v311_v57  ;;  %vm316_vm9 = vcmp.eq.f32.partialorder %v311_v57, 0.0 }
 0x313   :  { %462 = vpow2.f32 %v286_v11 }
 0x31c   :  { %v461_v59 = vpop.eup %460 }
 0x31d   :  { %v313_v60 = vmul.f32 %v461_v59, %v311_v57  ;;  %v463_v27 = vpop.eup %462 }
 0x31e   :  { %v289_v19 = vmul.f32 %v463_v27, %v288_v18 }
 0x31f   :  { %v315_v61 = vsel %vm314_vm8, %v311_v57, %v313_v60 }
 0x320   :  { %v318_v63 = vsel %vm316_vm9, %v317_v62, %v315_v61 }
 0x321   :  { %v320_v0 = vmul.f32 0.47942555, %v318_v63 }
 0x323   :  { %v321_v17 = vsub.f32 %v319_v1, %v320_v0 }
 0x325   :  { %v324_v2 = vsel %vm322_vm10, %v321_v17, %v349_v16 }
 0x326   :  { %v325_v9 = vsel %vm307_vm4, %v324_v2, %v308_v7 }
 0x327   :  { %v326_v10 = vmul.f32 64.0, %v325_v9 }
 0x329   :  { %v329_v13 = vsub.f32 %v326_v10, %v328_v49 }
 0x32b   :  { %v330_v15 = vmul.f32 1.442695, %v329_v13 }
 0x32d   :  { %464 = vpow2.f32 %v330_v15 }
 0x32e   :  { %466 = vpow2.f32 %v333_v28 }
 0x337   :  { %v465_v22 = vpop.eup %464 }
 0x338   :  { %v467_v23 = vpop.eup %466 }
 0x339   :  { %v335_v24 = vsub.f32 %v465_v22, %v467_v23 }
 0x33b   :  { %v336_v35 = vsel %vm307_vm4, %v335_v24, 0.0 }
 0x36c   :  { %v299_v20 = vpop.xlane.xlu0 %298 }
 0x36d   :  { %v300_v21 = vadd.f32 %v299_v20, %v289_v19 }
 0x36f   :  { %301 = vst.msk [vmem:[#allocation4] sm:$0xff] %vm31_vm3, %v300_v21 }
 0x376   :  { %v337_v34 = vld [vmem:[#allocation4] sm:$0xff] }
 0x377   :  { %v338_v25 = vadd.f32 %v337_v34, %v336_v35 }
 0x379   :  { %468 = vlog2.f32 %v338_v25 }
 0x383   :  { %v469_v26 = vpop.eup %468 }
 0x384   :  { %v340_v29 = vmul.f32 0.6931472, %v469_v26 }
 0x386   :  { %v341_v30 = vadd.f32 %v340_v29, %v328_v49 }
 0x388   :  { %v342_v38 = vsub.f32 %v341_v30, %v326_v10 }
 0x38a   :  { %343 = vst.msk [vmem:[%s669_s3] sm:$0xff] %vm31_vm3, %v342_v38 }

</bundles_post_ra>
